<compile_context>
chip_gen: v5e
topology: v5e:2x2
jax: 0.10.0
libtpu: 0.0.40
codegen_flags: <defaults>
</compile_context>

<pallas_src>
import functools

import jax
import jax.numpy as jnp
from jax.experimental import pallas as pl
from jax.experimental.pallas import tpu as pltpu


def _cdiv(a, b):
    return (a + b - 1) // b


def _round_up(a, b):
    return _cdiv(a, b) * b


# ---------------------------------------------------------------------------
# Kernel 1: spatial-sum (global average pool numerator), tiled over HW.
# ---------------------------------------------------------------------------
def _pool_sum_kernel(x_ref, sum_ref, acc_ref, *, n_chunks):
    # x_ref:   (Bt, C, T)     tile of the image (f32 or bf16)
    # sum_ref: (1, Bt, C, 1)  f32 output block, resident across the HW axis
    # acc_ref: (Bt, C, 128)   f32 running partial sums (scratch)
    @pl.when(pl.program_id(2) == 0)
    def _():
        acc_ref[...] = jnp.zeros_like(acc_ref)

    # Steady state: pure vreg-wide loads + VPU adds into the 128-wide
    # accumulator; no cross-lane reduce and no masked narrow store per step.
    if n_chunks <= 16:
        part = acc_ref[...]
        for i in range(n_chunks):
            part = part + x_ref[:, :, pl.ds(i * 128, 128)].astype(jnp.float32)
        acc_ref[...] = part
    else:
        def body(i, part):
            off = pl.multiple_of(i * 128, 128)
            return part + x_ref[:, :, pl.ds(off, 128)].astype(jnp.float32)

        acc_ref[...] = jax.lax.fori_loop(0, n_chunks, body, acc_ref[...],
                                         unroll=8)

    # Single 128 -> 1 lane reduce + narrow store only on the last HW step.
    @pl.when(pl.program_id(2) == pl.num_programs(2) - 1)
    def _():
        sum_ref[...] = jnp.sum(acc_ref[...], axis=2, keepdims=True)[None, ...]


# ---------------------------------------------------------------------------
# Kernel 2: apply channel gate + spatial gate, elementwise over HW tiles.
# ---------------------------------------------------------------------------
def _apply_kernel(gate_ref, x_ref, o_ref, *, inv_c):
    # gate_ref: (Bt, C, 1) f32 per-channel sigmoid gate (precomputed)
    # x_ref:    (Bt, C, T) f32/bf16
    # o_ref:    (Bt, C, T) f32/bf16
    x = x_ref[...].astype(jnp.float32)
    g = gate_ref[...]
    chan = g * x                                           # channel attention
    # Spatial gate: mean over C is a cheap sublane-axis sum (true f32 reduce,
    # no MXU emulation), result is (Bt, 1, T) and broadcasts over C.
    sp = jax.nn.sigmoid(jnp.sum(chan, axis=1, keepdims=True) * inv_c)
    o_ref[...] = (sp * chan).astype(o_ref.dtype)


# ---------------------------------------------------------------------------
# Generation-aware VMEM budget + tile-size selection.
# ---------------------------------------------------------------------------
def _vmem_budget():
    """Returns (max x-tile bytes, vmem_limit_bytes), generation-aware."""
    try:
        phys = int(pltpu.get_tpu_info().vmem_capacity_bytes)
    except Exception:
        phys = 64 << 20           # unknown -> assume the smallest (v7x per-TC)
    if phys >= (96 << 20):        # v5e / v6e: 128 MiB physical VMEM
        return 8 << 20, 64 << 20
    return 4 << 20, 48 << 20      # v7x: 64 MiB per TensorCore


def _pick_hw_tile(hw, c, dtype_bytes, max_tile_bytes):
    """Lane-dense HW tile chosen from the VMEM budget, not from divisibility.

    Returns T (multiple of 128, C*T*bytes <= budget whenever hw allows); the
    caller pads HW up to a multiple of T.  Tiles are balanced so the zero
    padding waste is < 128 lanes per tile.
    """
    lane_cap = max(128, ((max_tile_bytes // (c * dtype_bytes)) // 128) * 128)
    hw_ceil = _round_up(hw, 128)
    n_t = _cdiv(hw_ceil, lane_cap)          # fewest tiles that respect the cap
    return _round_up(_cdiv(hw_ceil, n_t), 128)


def _pick_batch_tile(b, per_image_bytes, max_tile_bytes, target_bytes=512 * 1024):
    """Widen the batch block until each grid step moves >= ~0.5 MiB."""
    best = 1
    for bt in range(1, b + 1):
        if b % bt != 0:
            continue
        if bt * per_image_bytes > max_tile_bytes and bt > 1:
            break
        best = bt
        if bt * per_image_bytes >= target_bytes:
            break
    return best


# ---------------------------------------------------------------------------
# Wrapper.
# ---------------------------------------------------------------------------
def global_attention_block(x_nchw, w1, b1, w2, b2, *, bf16_hbm=False):
    """x_nchw: (B, C, H, W); w1,w2: (C, C); b1,b2: (C,). Returns (B, C, H, W).

    bf16_hbm=True streams x/out through HBM as bf16 (accumulation, gating and
    sigmoids stay f32 in-kernel): ~1.3-1.5x on bandwidth-starved v5e at the
    cost of bf16 rounding on the streamed tensors.  Off by default.
    """
    B, C, H, W = x_nchw.shape
    HW = H * W

    max_tile_bytes, vmem_limit = _vmem_budget()
    stream_dtype = jnp.bfloat16 if bf16_hbm else x_nchw.dtype
    dtype_bytes = jnp.dtype(stream_dtype).itemsize

    # --- Tiling: VMEM-budget-first tile, then pad HW up to a multiple of T. --
    T = _pick_hw_tile(HW, C, dtype_bytes, max_tile_bytes)
    HWp = _round_up(HW, T)
    n_t = HWp // T
    n_chunks = T // 128

    x_flat = x_nchw.reshape(B, C, HW).astype(stream_dtype)
    if HWp != HW:
        # Zero padding: does not perturb the sums (true HW used as divisor),
        # sliced off at the end.
        x_flat = jnp.pad(x_flat, ((0, 0), (0, 0), (0, HWp - HW)))

    Bt = _pick_batch_tile(B, C * T * dtype_bytes, max_tile_bytes)
    n_b = B // Bt

    # --- Phase 1: per-(batch, channel) spatial sums (Pallas, HW tiled). ------
    # If the batch axis collapses to a single block, split the HW reduction in
    # two so both TensorCores (v7x megacore) share the pooling traffic.
    n_split = 2 if (n_b == 1 and n_t >= 2 and n_t % 2 == 0) else 1
    n_tp = n_t // n_split

    partials = pl.pallas_call(
        functools.partial(_pool_sum_kernel, n_chunks=n_chunks),
        out_shape=jax.ShapeDtypeStruct((n_split, B, C, 1), jnp.float32),
        grid_spec=pltpu.PrefetchScalarGridSpec(
            num_scalar_prefetch=0,
            grid=(n_split, n_b, n_tp),
            in_specs=[pl.BlockSpec(
                (Bt, C, T), lambda s, b, t: (b, 0, s * n_tp + t))],
            out_specs=pl.BlockSpec(
                (1, Bt, C, 1), lambda s, b, t: (s, b, 0, 0)),
            scratch_shapes=[pltpu.VMEM((Bt, C, 128), jnp.float32)],
        ),
        compiler_params=pltpu.CompilerParams(
            dimension_semantics=("parallel", "parallel", "arbitrary"),
            vmem_limit_bytes=vmem_limit,
        ),
        cost_estimate=pl.CostEstimate(
            flops=B * C * HWp,
            transcendentals=0,
            bytes_accessed=B * C * HWp * dtype_bytes + n_split * B * C * 4,
        ),
    )(x_flat)

    sums = jnp.sum(partials, axis=0)                 # (B, C, 1) f32
    pooled = sums[:, :, 0] * (1.0 / float(HW))       # true mean, pad excluded

    # --- Phase 2: batched 1x1-conv gate MLP (tiny, lane-dense, plain XLA). ---
    hp = jax.lax.Precision.HIGHEST
    y1 = jax.nn.relu(jnp.dot(pooled, w1.T, precision=hp) + b1)       # (B, C)
    gate = jax.nn.sigmoid(jnp.dot(y1, w2.T, precision=hp) + b2)      # (B, C)
    gate = gate.astype(jnp.float32)[:, :, None]                      # (B, C, 1)

    # --- Phase 3: apply channel + spatial attention, tiled over HW. ----------
    # (pipeline_mode=pl.Buffered(3) on the x input is a further 0-5% knob once
    # measured; left at the default depth of 2 to stay safely within VMEM.)
    out_flat = pl.pallas_call(
        functools.partial(_apply_kernel, inv_c=1.0 / C),
        out_shape=jax.ShapeDtypeStruct((B, C, HWp), stream_dtype),
        grid_spec=pltpu.PrefetchScalarGridSpec(
            num_scalar_prefetch=0,
            grid=(n_b, n_t),
            in_specs=[
                pl.BlockSpec((Bt, C, 1), lambda b, t: (b, 0, 0)),    # gate
                pl.BlockSpec((Bt, C, T), lambda b, t: (b, 0, t)),    # x
            ],
            out_specs=pl.BlockSpec((Bt, C, T), lambda b, t: (b, 0, t)),
        ),
        compiler_params=pltpu.CompilerParams(
            dimension_semantics=("parallel", "parallel"),
            vmem_limit_bytes=vmem_limit,
        ),
        cost_estimate=pl.CostEstimate(
            flops=4 * B * C * HWp,
            transcendentals=B * HWp,
            bytes_accessed=2 * B * C * HWp * dtype_bytes + B * C * 4,
        ),
    )(gate, x_flat)

    if HWp != HW:
        out_flat = out_flat[:, :, :HW]
    # In bf16_hbm mode the streamed output is returned as bf16 by design
    # (casting back to f32 would add another full HBM pass).
    return out_flat.reshape(B, C, H, W)


def _reference(x, w1, b1, w2, b2):
    # Pure-JAX reference mirroring the PyTorch module (NCHW).
    hp = jax.lax.Precision.HIGHEST
    pooled = jnp.mean(x, axis=(2, 3))                          # (B, C)
    y1 = jax.nn.relu(jnp.dot(pooled, w1.T, precision=hp) + b1)
    gate = jax.nn.sigmoid(jnp.dot(y1, w2.T, precision=hp) + b2)
    chan = gate[:, :, None, None] * x
    sp = jax.nn.sigmoid(jnp.mean(chan, axis=1, keepdims=True))
    return sp * chan


if __name__ == "__main__":
    B, C, H, W = 2, 4, 16, 16
    key = jax.random.PRNGKey(0)
    kx, k1, k2, k3, k4 = jax.random.split(key, 5)

    x = jax.random.normal(kx, (B, C, H, W), dtype=jnp.float32)
    # Conv2d(C, C, kernel_size=1) weights: (C, C, 1, 1) -> squeeze to (C, C)
    w1 = jax.random.normal(k1, (C, C), dtype=jnp.float32) * 0.5
    b1 = jax.random.normal(k2, (C,), dtype=jnp.float32) * 0.1
    w2 = jax.random.normal(k3, (C, C), dtype=jnp.float32) * 0.5
    b2 = jax.random.normal(k4, (C,), dtype=jnp.float32) * 0.1

    out = global_attention_block(x, w1, b1, w2, b2)
    out = jax.block_until_ready(out)

    ref = _reference(x, w1, b1, w2, b2)
    assert out.shape == (B, C, H, W)
    assert jnp.allclose(out, ref, atol=1e-5, rtol=1e-5), "mismatch vs reference"

    print("KERNEL_OK")
</pallas_src>

<mosaic_0001>
module attributes {stable_mosaic.version = 11 : i64} {
  func.func @_pool_sum_kernel(%arg0: i32, %arg1: i32, %arg2: i32, %arg3: memref<2x4x256xf32, #tpu.memory_space<vmem>>, %arg4: memref<1x2x4x1xf32, #tpu.memory_space<vmem>>, %arg5: memref<2x4x128xf32, #tpu.memory_space<vmem>>) attributes {dimension_semantics = [#tpu.dimension_semantics<parallel>, #tpu.dimension_semantics<parallel>, #tpu.dimension_semantics<arbitrary>], iteration_bounds = array<i64: 1, 1, 1>, scalar_prefetch = 0 : i64, scratch_operands = 1 : i64, tpu.core_type = #tpu.core_type<tc>, window_params = [{transform_indices = @transform_0, window_bounds = array<i64: 2, 4, 256>}, {transform_indices = @transform_1, window_bounds = array<i64: 1, 2, 4, 1>}]} {
    %c0_i32 = arith.constant 0 : i32
    %0 = arith.cmpi eq, %arg2, %c0_i32 : i32
    %1 = arith.extui %0 : i1 to i32
    %c0_i32_0 = arith.constant 0 : i32
    %2 = arith.cmpi ne, %1, %c0_i32_0 : i32
    scf.if %2 {
      %cst = arith.constant 0.000000e+00 : f32
      %12 = vector.broadcast %cst : f32 to vector<2x4x128xf32>
      %c0_13 = arith.constant 0 : index
      %c0_14 = arith.constant 0 : index
      %c0_15 = arith.constant 0 : index
      %13 = vector.load %arg5[%c0_13, %c0_14, %c0_15] : memref<2x4x128xf32, #tpu.memory_space<vmem>>, vector<2x4x128xf32>
      tpu.vector_store %arg5[%c0_13, %c0_14, %c0_15], %12 {strides = array<i32>} : memref<2x4x128xf32, #tpu.memory_space<vmem>>, vector<2x4x128xf32>,
    } else {
    }
    %c0 = arith.constant 0 : index
    %c0_1 = arith.constant 0 : index
    %c0_2 = arith.constant 0 : index
    %3 = vector.load %arg5[%c0, %c0_1, %c0_2] : memref<2x4x128xf32, #tpu.memory_space<vmem>>, vector<2x4x128xf32>
    %c0_3 = arith.constant 0 : index
    %c0_4 = arith.constant 0 : index
    %c0_5 = arith.constant 0 : index
    %4 = vector.load %arg3[%c0_3, %c0_4, %c0_5] : memref<2x4x256xf32, #tpu.memory_space<vmem>>, vector<2x4x128xf32>
    %5 = arith.addf %3, %4 : vector<2x4x128xf32>
    %c0_6 = arith.constant 0 : index
    %c0_7 = arith.constant 0 : index
    %c128 = arith.constant 128 : index
    %6 = vector.load %arg3[%c0_6, %c0_7, %c128] : memref<2x4x256xf32, #tpu.memory_space<vmem>>, vector<2x4x128xf32>
    %7 = arith.addf %5, %6 : vector<2x4x128xf32>
    %c0_8 = arith.constant 0 : index
    %c0_9 = arith.constant 0 : index
    %c0_10 = arith.constant 0 : index
    %8 = vector.load %arg5[%c0_8, %c0_9, %c0_10] : memref<2x4x128xf32, #tpu.memory_space<vmem>>, vector<2x4x128xf32>
    tpu.vector_store %arg5[%c0_8, %c0_9, %c0_10], %7 {strides = array<i32>} : memref<2x4x128xf32, #tpu.memory_space<vmem>>, vector<2x4x128xf32>,
    %c0_i32_11 = arith.constant 0 : i32
    %9 = arith.cmpi eq, %arg2, %c0_i32_11 : i32
    %10 = arith.extui %9 : i1 to i32
    %c0_i32_12 = arith.constant 0 : i32
    %11 = arith.cmpi ne, %10, %c0_i32_12 : i32
    scf.if %11 {
      %c0_13 = arith.constant 0 : index
      %c0_14 = arith.constant 0 : index
      %c0_15 = arith.constant 0 : index
      %12 = vector.load %arg5[%c0_13, %c0_14, %c0_15] : memref<2x4x128xf32, #tpu.memory_space<vmem>>, vector<2x4x128xf32>
      %cst = arith.constant dense<0.000000e+00> : vector<2x4xf32>
      %13 = vector.multi_reduction <add>, %12, %cst [2] : vector<2x4x128xf32> to vector<2x4xf32>
      %14 = vector.shape_cast %13 : vector<2x4xf32> to vector<2x4x1xf32>
      %15 = vector.shape_cast %14 : vector<2x4x1xf32> to vector<1x2x4x1xf32>
      %c0_16 = arith.constant 0 : index
      %c0_17 = arith.constant 0 : index
      %c0_18 = arith.constant 0 : index
      %c0_19 = arith.constant 0 : index
      %16 = vector.load %arg4[%c0_16, %c0_17, %c0_18, %c0_19] : memref<1x2x4x1xf32, #tpu.memory_space<vmem>>, vector<1x2x4x1xf32>
      tpu.vector_store %arg4[%c0_16, %c0_17, %c0_18, %c0_19], %15 {strides = array<i32>} : memref<1x2x4x1xf32, #tpu.memory_space<vmem>>, vector<1x2x4x1xf32>,
    } else {
    }
    return
  }
  func.func @transform_0(%arg0: i32, %arg1: i32, %arg2: i32) -> (i32, i32, i32) {
    %c1_i32 = arith.constant 1 : i32
    %0 = arith.muli %arg0, %c1_i32 : i32
    %1 = arith.addi %0, %arg2 : i32
    %c0_i32 = arith.constant 0 : i32
    %c0_i32_0 = arith.constant 0 : i32
    return %arg1, %c0_i32, %1 : i32, i32, i32
  }
  func.func @transform_1(%arg0: i32, %arg1: i32, %arg2: i32) -> (i32, i32, i32, i32) {
    %c0_i32 = arith.constant 0 : i32
    %c0_i32_0 = arith.constant 0 : i32
    %c0_i32_1 = arith.constant 0 : i32
    return %arg0, %arg1, %c0_i32, %c0_i32_0 : i32, i32, i32, i32
  }
}

</mosaic_0001>

<bundles_post_ra>
// kernel: tpu_custom_call.1
= control target key start
LH: loop header
LB: loop body
LE: loop exit
PB: predicated region body
PF: predicated region fallthrough
CT: control target
= control target key end

     0   :  { %6 = vsyncpa [#allocation4], 0  ;;  %s98_s9 = smov [#allocation3]   ;;  %s99_s11 = smov 128   ;;  %s121_s0 = inlined_call_operand.hbm [shape: f32[2,4,256], index: 0, kind: input, shape index: {}]   ;;  %s122_s1 = inlined_call_operand.vmem [shape: f32[1,2,4,1], index: 1, kind: output, shape index: {}]  }
   0x1   :  { %s15_s8 = sshll.u32 %s121_s0, 4  ;;  %s17_s10 = sshll.u32 %s98_s9, 4  ;;  %s16_s8 = int_to_ptr.hbm [resolvable:$true] %s15_s8  ;;  %s18_s10 = int_to_ptr.vmem [resolvable:$true] %s17_s10 }
   0x2   :  { %s100_s12 = smov 8  }
   0x3   :  { %23 = dma.hbm_to_vmem [thread:$0]  %s16_s8, 256, %s18_s10, [#allocation4], %s99_s11, %s99_s11, %s100_s12  }
   0x4   :  { %96 = dma.done.wait [#allocation4], 256  }
   0x5   :  { %97 = vsyncadd [#allocation4], 4294967040  ;;  %v101_v0 = vmov 0.0   ;;  %v38_v1 = vld [vmem:[#allocation3] sm:$0xf]  ;;  %vm53_vm0 = vcmask 1043456  }
   0x6   :  { %34 = vst [vmem:[#allocation2] sm:$0xf] %v101_v0  ;;  %v39_v2 = vld [vmem:[#allocation3 + $0x8] sm:$0xf]  ;;  %v42_v4 = vld [vmem:[#allocation3 + $0x4] sm:$0xf] }
   0x7   :  { %35 = vst [vmem:[#allocation2 + $0x4] sm:$0xf] %v101_v0  ;;  %v43_v7 = vld [vmem:[#allocation3 + $0xc] sm:$0xf]  ;;  %vm60_vm1 = vcmask 3072  }
   0xd   :  { %v36_v3 = vld [vmem:[#allocation2] sm:$0xf] }
   0xe   :  { %v40_v5 = vadd.f32 %v38_v1, %v36_v3  ;;  %v37_v6 = vld [vmem:[#allocation2 + $0x4] sm:$0xf] }
   0xf   :  { %v41_v8 = vadd.f32 %v39_v2, %v37_v6 }
  0x10   :  { %v44_v9 = vadd.f32 %v42_v4, %v40_v5 }
  0x11   :  { %v45_v10 = vadd.f32 %v43_v7, %v41_v8 }
  0x12   :  { %46 = vst [vmem:[#allocation2] sm:$0xf] %v44_v9 }
  0x13   :  { %47 = vst [vmem:[#allocation2 + $0x4] sm:$0xf] %v45_v10 }
  0x19   :  { %v51_v11 = vld [vmem:[#allocation2] sm:$0xf] }
  0x1a   :  { %v54_v12 = vsel %vm53_vm0, %v51_v11, 0.0  ;;  %v52_v13 = vld [vmem:[#allocation2 + $0x4] sm:$0xf] }
  0x1b   :  { %55 = vadd.xlane.f32.xlu0 %v54_v12  ;;  %v57_v14 = vsel %vm53_vm0, %v52_v13, 0.0 }
  0x23   :  { %58 = vadd.xlane.f32.xlu0 %v57_v14 }
  0x8e   :  { %v56_v15 = vpop.xlane.xlu0 %55 }
  0x8f   :  { %61 = vst.msk [vmem:[%s122_s1] sm:$0xf] %vm60_vm1, %v56_v15 }
  0x96   :  { %v59_v16 = vpop.xlane.xlu0 %58 }
  0x97   :  { %62 = vst.msk [vmem:[%s122_s1 + $0x4] sm:$0xf] %vm60_vm1, %v59_v16 }
  0x98   :  { %67 = vsyncpa [#allocation4], 1 }

</bundles_post_ra>
